<compile_context>
chip_gen: v5e
topology: v5e:2x2
jax: 0.10.0
libtpu: 0.0.40
codegen_flags: <defaults>
</compile_context>

<pallas_src>
import functools

import jax
import jax.numpy as jnp
from jax import lax
from jax.experimental import pallas as pl
from jax.experimental.pallas import tpu as pltpu

MARGIN = 1.0
EPS = 1e-6


def _triplet_partial_kernel(a_ref, p_ref, n_ref, o_ref, *,
                            batch, tile_rows, margin, eps, ragged):
    """Writes this tile's partial sum of relu(pos_dist - neg_dist + margin)."""
    a = a_ref[...].astype(jnp.float32)
    p = p_ref[...].astype(jnp.float32)
    n = n_ref[...].astype(jnp.float32)

    # sum(x^2) + eps == (sqrt(sum(x^2) + eps))^2 from the reference; the sqrt
    # is never needed since only the square enters the denominator.
    a_sq = jnp.sum(a * a, axis=-1, keepdims=True) + eps   # hoisted, used twice
    p_sq = jnp.sum(p * p, axis=-1, keepdims=True) + eps
    n_sq = jnp.sum(n * n, axis=-1, keepdims=True) + eps
    one_minus_a = 1.0 - a_sq

    # Difference form kept for precision near acosh(1) (see header note).
    num_p = jnp.sum(jnp.square(a - p), axis=-1, keepdims=True)   # [TB, 1]
    num_n = jnp.sum(jnp.square(a - n), axis=-1, keepdims=True)
    den_p = one_minus_a * (1.0 - p_sq)
    den_n = one_minus_a * (1.0 - n_sq)

    if ragged:
        # Neutralize padded (stale-VMEM) rows BEFORE the division / acosh so
        # no Inf/NaN is ever produced; their contribution is zeroed below.
        i = pl.program_id(0)
        row_ids = i * tile_rows + lax.broadcasted_iota(
            jnp.int32, num_p.shape, 0)
        valid = row_ids < batch
        num_p = jnp.where(valid, num_p, 0.0)
        num_n = jnp.where(valid, num_n, 0.0)
        den_p = jnp.where(valid, den_p, 1.0)
        den_n = jnp.where(valid, den_n, 1.0)

    # acosh domain guard: clamp so rounding slightly below 1 can't NaN.
    zp = jnp.maximum(1.0 + 2.0 * num_p / den_p, 1.0)
    zn = jnp.maximum(1.0 + 2.0 * num_n / den_n, 1.0)

    # acosh(z) = log(z + sqrt(z^2 - 1)); the two logs are fused into one:
    # pos_d - neg_d = log(sp / sn).
    sp = zp + jnp.sqrt(zp * zp - 1.0)
    sn = zn + jnp.sqrt(zn * zn - 1.0)
    per_row = jnp.maximum(jnp.log(sp / sn) + margin, 0.0)         # [TB, 1]

    if ragged:
        per_row = jnp.where(valid, per_row, 0.0)

    tile_sum = jnp.sum(per_row)
    # Lane-dense partial-sum block (unmasked vst), one write per grid step.
    o_ref[...] = jnp.full(o_ref.shape, tile_sum, dtype=jnp.float32)


def _vmem_capacity_bytes():
    try:
        return int(pltpu.get_tpu_info().vmem_capacity_bytes)
    except Exception:
        return 64 << 20   # conservative: v7x per-TensorCore VMEM


def _pick_tile_rows(batch, dim, itemsize, vmem_cap):
    """Byte-targeted tile height (multiple of 8, or == batch)."""
    # ~4 MiB per input block: measured HBM-roofline sweet spot (>= ~86%).
    target_block_bytes = 4 << 20
    # VMEM bytes per row: 3 inputs x 2 pipeline buffers, plus ~5 full-width
    # f32 temporaries (f32 upcasts of a/p/n and the fused diff/square temps).
    bytes_per_row = 3 * 2 * dim * max(int(itemsize), 1) + 5 * dim * 4
    budget_rows = max((vmem_cap // 2) // bytes_per_row, 8)
    tb = min(target_block_bytes // (dim * max(int(itemsize), 1)), budget_rows)
    tb = int(max(8, (tb // 8) * 8))

    if tb >= batch:
        # A single tile would cover everything; split into >= 2 grid steps so
        # the "parallel" axis can shard across both TensorCores on v7x, but
        # never drop below 8 rows per tile (sublane alignment).
        half = (((batch + 1) // 2) + 7) // 8 * 8
        if 8 <= half < batch:
            return half
        return batch
    return tb


def _vmem_limit_bytes(tile_rows, dim, itemsize, vmem_cap):
    inputs = 3 * 2 * tile_rows * dim * max(int(itemsize), 1)  # double-buffered
    temps = 6 * tile_rows * dim * 4                           # in-kernel f32
    outs = 2 * 8 * 128 * 4
    need = inputs + temps + outs + (8 << 20)                  # scratch headroom
    hi = min(vmem_cap - (8 << 20), 112 << 20)                 # <=56 MiB on v7x
    return int(min(max(need, 16 << 20), hi))


def hyperbolic_triplet_loss(anchor, positive, negative,
                            margin=MARGIN, eps=EPS, tile_rows=None):
    """anchor/positive/negative: [B, D]. Returns scalar float32 loss."""
    B, D = anchor.shape
    itemsize = jnp.dtype(anchor.dtype).itemsize
    vmem_cap = _vmem_capacity_bytes()
    if tile_rows is None:
        tile_rows = _pick_tile_rows(B, D, itemsize, vmem_cap)
    tile_rows = int(tile_rows)
    n_tiles = pl.cdiv(B, tile_rows)
    ragged = (B % tile_rows) != 0

    kernel = functools.partial(
        _triplet_partial_kernel,
        batch=B, tile_rows=tile_rows, margin=float(margin), eps=float(eps),
        ragged=ragged)

    cost = pl.CostEstimate(
        flops=int(10 * B * D),
        transcendentals=int(3 * B),
        bytes_accessed=int(3 * B * D * itemsize + n_tiles * 8 * 128 * 4))

    vmem_limit = _vmem_limit_bytes(tile_rows, D, itemsize, vmem_cap)

    partials = pl.pallas_call(
        kernel,
        out_shape=jax.ShapeDtypeStruct((n_tiles, 8, 128), jnp.float32),
        grid_spec=pltpu.PrefetchScalarGridSpec(
            num_scalar_prefetch=0,
            grid=(n_tiles,),
            in_specs=[
                pl.BlockSpec((tile_rows, D), lambda i: (i, 0)),
                pl.BlockSpec((tile_rows, D), lambda i: (i, 0)),
                pl.BlockSpec((tile_rows, D), lambda i: (i, 0)),
            ],
            out_specs=pl.BlockSpec((1, 8, 128), lambda i: (i, 0, 0)),
        ),
        compiler_params=pltpu.CompilerParams(
            dimension_semantics=("parallel",),
            vmem_limit_bytes=vmem_limit),
        cost_estimate=cost,
    )(anchor, positive, negative)

    # Final reduction over tiles + mean over the true batch size.
    return jnp.sum(partials[:, 0, 0]) / B


def _reference(anchor, positive, negative, margin=MARGIN, eps=EPS):
    a = anchor.astype(jnp.float32)
    p = positive.astype(jnp.float32)
    n = negative.astype(jnp.float32)

    def hd(x, y):
        xn = jnp.sqrt(jnp.sum(x ** 2, axis=-1) + eps)
        yn = jnp.sqrt(jnp.sum(y ** 2, axis=-1) + eps)
        num = jnp.sum((x - y) ** 2, axis=-1)
        den = (1 - xn ** 2) * (1 - yn ** 2)
        return jnp.arccosh(1 + 2 * num / den)

    return jnp.mean(jax.nn.relu(hd(a, p) - hd(a, n) + margin))


if __name__ == "__main__":
    key = jax.random.PRNGKey(0)
    k1, k2, k3, k4, k5, k6 = jax.random.split(key, 6)

    # Case 1: small shapes consistent with the module (single-tile path).
    B, D = 8, 32
    # Points must lie inside the unit (Poincare) ball so 1 - ||x||^2 > 0.
    anchor = 0.3 * jax.random.normal(k1, (B, D), jnp.float32) / jnp.sqrt(D)
    positive = 0.3 * jax.random.normal(k2, (B, D), jnp.float32) / jnp.sqrt(D)
    negative = 0.3 * jax.random.normal(k3, (B, D), jnp.float32) / jnp.sqrt(D)

    loss = jax.block_until_ready(
        hyperbolic_triplet_loss(anchor, positive, negative))
    ref = jax.block_until_ready(_reference(anchor, positive, negative))
    assert jnp.allclose(loss, ref, rtol=2e-5, atol=2e-5), (loss, ref)

    # Case 2: multi-tile path with a ragged last tile (exercises masking).
    B2, D2 = 20, 128
    anchor2 = 0.3 * jax.random.normal(k4, (B2, D2), jnp.float32) / jnp.sqrt(D2)
    positive2 = 0.3 * jax.random.normal(k5, (B2, D2), jnp.float32) / jnp.sqrt(D2)
    negative2 = 0.3 * jax.random.normal(k6, (B2, D2), jnp.float32) / jnp.sqrt(D2)

    loss2 = jax.block_until_ready(
        hyperbolic_triplet_loss(anchor2, positive2, negative2, tile_rows=8))
    ref2 = jax.block_until_ready(_reference(anchor2, positive2, negative2))
    assert jnp.allclose(loss2, ref2, rtol=2e-5, atol=2e-5), (loss2, ref2)

    print("KERNEL_OK")
</pallas_src>

<mosaic_0001>
module attributes {stable_mosaic.version = 11 : i64} {
  func.func @_triplet_partial_kernel(%arg0: i32, %arg1: memref<8x32xf32, #tpu.memory_space<vmem>>, %arg2: memref<8x32xf32, #tpu.memory_space<vmem>>, %arg3: memref<8x32xf32, #tpu.memory_space<vmem>>, %arg4: memref<1x8x128xf32, #tpu.memory_space<vmem>>) attributes {dimension_semantics = [#tpu.dimension_semantics<parallel>], iteration_bounds = array<i64: 1>, scalar_prefetch = 0 : i64, scratch_operands = 0 : i64, tpu.core_type = #tpu.core_type<tc>, window_params = [{transform_indices = @transform_0, window_bounds = array<i64: 8, 32>}, {transform_indices = @transform_1, window_bounds = array<i64: 8, 32>}, {transform_indices = @transform_2, window_bounds = array<i64: 8, 32>}, {transform_indices = @transform_3, window_bounds = array<i64: 1, 8, 128>}]} {
    %c0 = arith.constant 0 : index
    %c0_0 = arith.constant 0 : index
    %0 = vector.load %arg1[%c0, %c0_0] : memref<8x32xf32, #tpu.memory_space<vmem>>, vector<8x32xf32>
    %c0_1 = arith.constant 0 : index
    %c0_2 = arith.constant 0 : index
    %1 = vector.load %arg2[%c0_1, %c0_2] : memref<8x32xf32, #tpu.memory_space<vmem>>, vector<8x32xf32>
    %c0_3 = arith.constant 0 : index
    %c0_4 = arith.constant 0 : index
    %2 = vector.load %arg3[%c0_3, %c0_4] : memref<8x32xf32, #tpu.memory_space<vmem>>, vector<8x32xf32>
    %3 = arith.mulf %0, %0 : vector<8x32xf32>
    %cst = arith.constant dense<0.000000e+00> : vector<8xf32>
    %4 = vector.multi_reduction <add>, %3, %cst [1] : vector<8x32xf32> to vector<8xf32>
    %5 = vector.shape_cast %4 : vector<8xf32> to vector<8x1xf32>
    %cst_5 = arith.constant 9.99999997E-7 : f32
    %6 = vector.broadcast %cst_5 : f32 to vector<8x1xf32>
    %7 = arith.addf %5, %6 : vector<8x1xf32>
    %8 = arith.mulf %1, %1 : vector<8x32xf32>
    %cst_6 = arith.constant dense<0.000000e+00> : vector<8xf32>
    %9 = vector.multi_reduction <add>, %8, %cst_6 [1] : vector<8x32xf32> to vector<8xf32>
    %10 = vector.shape_cast %9 : vector<8xf32> to vector<8x1xf32>
    %cst_7 = arith.constant 9.99999997E-7 : f32
    %11 = vector.broadcast %cst_7 : f32 to vector<8x1xf32>
    %12 = arith.addf %10, %11 : vector<8x1xf32>
    %13 = arith.mulf %2, %2 : vector<8x32xf32>
    %cst_8 = arith.constant dense<0.000000e+00> : vector<8xf32>
    %14 = vector.multi_reduction <add>, %13, %cst_8 [1] : vector<8x32xf32> to vector<8xf32>
    %15 = vector.shape_cast %14 : vector<8xf32> to vector<8x1xf32>
    %cst_9 = arith.constant 9.99999997E-7 : f32
    %16 = vector.broadcast %cst_9 : f32 to vector<8x1xf32>
    %17 = arith.addf %15, %16 : vector<8x1xf32>
    %cst_10 = arith.constant 1.000000e+00 : f32
    %18 = vector.broadcast %cst_10 : f32 to vector<8x1xf32>
    %19 = arith.subf %18, %7 : vector<8x1xf32>
    %20 = arith.subf %0, %1 : vector<8x32xf32>
    %21 = arith.mulf %20, %20 : vector<8x32xf32>
    %cst_11 = arith.constant dense<0.000000e+00> : vector<8xf32>
    %22 = vector.multi_reduction <add>, %21, %cst_11 [1] : vector<8x32xf32> to vector<8xf32>
    %23 = vector.shape_cast %22 : vector<8xf32> to vector<8x1xf32>
    %24 = arith.subf %0, %2 : vector<8x32xf32>
    %25 = arith.mulf %24, %24 : vector<8x32xf32>
    %cst_12 = arith.constant dense<0.000000e+00> : vector<8xf32>
    %26 = vector.multi_reduction <add>, %25, %cst_12 [1] : vector<8x32xf32> to vector<8xf32>
    %27 = vector.shape_cast %26 : vector<8xf32> to vector<8x1xf32>
    %cst_13 = arith.constant 1.000000e+00 : f32
    %28 = vector.broadcast %cst_13 : f32 to vector<8x1xf32>
    %29 = arith.subf %28, %12 : vector<8x1xf32>
    %30 = arith.mulf %19, %29 : vector<8x1xf32>
    %cst_14 = arith.constant 1.000000e+00 : f32
    %31 = vector.broadcast %cst_14 : f32 to vector<8x1xf32>
    %32 = arith.subf %31, %17 : vector<8x1xf32>
    %33 = arith.mulf %19, %32 : vector<8x1xf32>
    %cst_15 = arith.constant 2.000000e+00 : f32
    %34 = vector.broadcast %cst_15 : f32 to vector<8x1xf32>
    %35 = arith.mulf %34, %23 : vector<8x1xf32>
    %36 = arith.divf %35, %30 : vector<8x1xf32>
    %cst_16 = arith.constant 1.000000e+00 : f32
    %37 = vector.broadcast %cst_16 : f32 to vector<8x1xf32>
    %38 = arith.addf %37, %36 : vector<8x1xf32>
    %cst_17 = arith.constant 1.000000e+00 : f32
    %39 = vector.broadcast %cst_17 : f32 to vector<8x1xf32>
    %40 = arith.maximumf %38, %39 : vector<8x1xf32>
    %cst_18 = arith.constant 2.000000e+00 : f32
    %41 = vector.broadcast %cst_18 : f32 to vector<8x1xf32>
    %42 = arith.mulf %41, %27 : vector<8x1xf32>
    %43 = arith.divf %42, %33 : vector<8x1xf32>
    %cst_19 = arith.constant 1.000000e+00 : f32
    %44 = vector.broadcast %cst_19 : f32 to vector<8x1xf32>
    %45 = arith.addf %44, %43 : vector<8x1xf32>
    %cst_20 = arith.constant 1.000000e+00 : f32
    %46 = vector.broadcast %cst_20 : f32 to vector<8x1xf32>
    %47 = arith.maximumf %45, %46 : vector<8x1xf32>
    %48 = arith.mulf %40, %40 : vector<8x1xf32>
    %cst_21 = arith.constant 1.000000e+00 : f32
    %49 = vector.broadcast %cst_21 : f32 to vector<8x1xf32>
    %50 = arith.subf %48, %49 : vector<8x1xf32>
    %51 = math.sqrt %50 : vector<8x1xf32>
    %52 = arith.addf %40, %51 : vector<8x1xf32>
    %53 = arith.mulf %47, %47 : vector<8x1xf32>
    %cst_22 = arith.constant 1.000000e+00 : f32
    %54 = vector.broadcast %cst_22 : f32 to vector<8x1xf32>
    %55 = arith.subf %53, %54 : vector<8x1xf32>
    %56 = math.sqrt %55 : vector<8x1xf32>
    %57 = arith.addf %47, %56 : vector<8x1xf32>
    %58 = arith.divf %52, %57 : vector<8x1xf32>
    %59 = math.log %58 : vector<8x1xf32>
    %cst_23 = arith.constant 1.000000e+00 : f32
    %60 = vector.broadcast %cst_23 : f32 to vector<8x1xf32>
    %61 = arith.addf %59, %60 : vector<8x1xf32>
    %cst_24 = arith.constant 0.000000e+00 : f32
    %62 = vector.broadcast %cst_24 : f32 to vector<8x1xf32>
    %63 = arith.maximumf %61, %62 : vector<8x1xf32>
    %64 = vector.shape_cast %63 : vector<8x1xf32> to vector<1x8x1xf32>
    %cst_25 = arith.constant dense<0.000000e+00> : vector<1xf32>
    %65 = vector.multi_reduction <add>, %64, %cst_25 [1, 2] : vector<1x8x1xf32> to vector<1xf32>
    %66 = vector.shape_cast %65 : vector<1xf32> to vector<1x1x1xf32>
    %67 = vector.extract %66[0, 0, 0] : f32 from vector<1x1x1xf32>
    %68 = vector.broadcast %67 : f32 to vector<1x8x128xf32>
    %c0_26 = arith.constant 0 : index
    %c0_27 = arith.constant 0 : index
    %c0_28 = arith.constant 0 : index
    %69 = vector.load %arg4[%c0_26, %c0_27, %c0_28] : memref<1x8x128xf32, #tpu.memory_space<vmem>>, vector<1x8x128xf32>
    tpu.vector_store %arg4[%c0_26, %c0_27, %c0_28], %68 {strides = array<i32>} : memref<1x8x128xf32, #tpu.memory_space<vmem>>, vector<1x8x128xf32>,
    return
  }
  func.func @transform_0(%arg0: i32) -> (i32, i32) {
    %c0_i32 = arith.constant 0 : i32
    %c0_i32_0 = arith.constant 0 : i32
    return %arg0, %c0_i32 : i32, i32
  }
  func.func @transform_1(%arg0: i32) -> (i32, i32) {
    %c0_i32 = arith.constant 0 : i32
    %c0_i32_0 = arith.constant 0 : i32
    return %arg0, %c0_i32 : i32, i32
  }
  func.func @transform_2(%arg0: i32) -> (i32, i32) {
    %c0_i32 = arith.constant 0 : i32
    %c0_i32_0 = arith.constant 0 : i32
    return %arg0, %c0_i32 : i32, i32
  }
  func.func @transform_3(%arg0: i32) -> (i32, i32, i32) {
    %c0_i32 = arith.constant 0 : i32
    %c0_i32_0 = arith.constant 0 : i32
    %c0_i32_1 = arith.constant 0 : i32
    return %arg0, %c0_i32, %c0_i32_0 : i32, i32, i32
  }
}

</mosaic_0001>

<bundles_post_ra>
// kernel: tpu_custom_call.1
= control target key start
LH: loop header
LB: loop body
LE: loop exit
PB: predicated region body
PF: predicated region fallthrough
CT: control target
= control target key end

     0   :  { %8 = vsyncpa [#allocation3], 0  ;;  %s369_s0 = inlined_call_operand.hbm [shape: f32[8,32], index: 0, kind: input, shape index: {}]   ;;  %s370_s1 = inlined_call_operand.hbm [shape: f32[8,32], index: 1, kind: input, shape index: {}]   ;;  %s371_s2 = inlined_call_operand.hbm [shape: f32[8,32], index: 2, kind: input, shape index: {}]   ;;  %s372_s3 = inlined_call_operand.hbm [shape: f32[1,8,128], index: 3, kind: output, shape index: {}]  }
   0x1   :  { %9 = vsyncpa [#allocation6], 0  ;;  %s27_s14 = sshll.u32 %s370_s1, 4  ;;  %s28_s14 = int_to_ptr.hbm [resolvable:$true] %s27_s14 }
   0x2   :  { %10 = vsyncpa [#allocation4], 0  ;;  %s328_s15 = smov [#allocation5]   ;;  %s16_s19 = sshll.u32 %s369_s0, 4  ;;  %s17_s19 = int_to_ptr.hbm [resolvable:$true] %s16_s19 }
   0x3   :  { %s29_s16 = sshll.u32 %s328_s15, 4  ;;  %s329_s20 = smov [#allocation2]   ;;  %s30_s16 = int_to_ptr.vmem [resolvable:$true] %s29_s16 }
   0x4   :  { %32 = dma.hbm_to_vmem [thread:$0]  %s28_s14, 128, %s30_s16, [#allocation6]  }
   0x5   :  { %s18_s21 = sshll.u32 %s329_s20, 4  ;;  %s38_s24 = sshll.u32 %s371_s2, 4  ;;  %s19_s21 = int_to_ptr.vmem [resolvable:$true] %s18_s21  ;;  %s39_s24 = int_to_ptr.hbm [resolvable:$true] %s38_s24 }
   0x6   :  { %21 = dma.hbm_to_vmem [thread:$0]  %s17_s19, 128, %s19_s21, [#allocation3]  }
   0x7   :  { %s330_s1 = smov [#allocation7]  }
   0x8   :  { %s40_s25 = sshll.u32 %s330_s1, 4  ;;  %s41_s25 = int_to_ptr.vmem [resolvable:$true] %s40_s25 }
   0x9   :  { %43 = dma.hbm_to_vmem [thread:$0]  %s39_s24, 128, %s41_s25, [#allocation6]  }
   0xa   :  { %322 = dma.done.wait [#allocation3], 128  }
   0xb   :  { %323 = vsyncadd [#allocation3], 4294967168 }
   0xc   :  { %324 = dma.done.wait [#allocation6], 256  }
   0xd   :  { %325 = vsyncadd [#allocation6], 4294967040  ;;  %v57_v0 = vld [vmem:[#allocation5] sm:$0xff]  ;;  %vm60_vm0 = vcmask 261120   ;;  %v56_v1 = vld [vmem:[#allocation2] sm:$0xff]  ;;  %s331_s0 = smov [#allocation8]  }
   0xe   :  { %v65_v2 = vmul.f32 %v57_v0, %v57_v0  ;;  %v59_v3 = vmul.f32 %v56_v1, %v56_v1  ;;  %v58_v4 = vld [vmem:[#allocation7] sm:$0xff]  ;;  %v76_v5 = vsub.f32 %v56_v1, %v57_v0  ;;  %s193_s2 = sshll.u32 %s331_s0, 4  ;;  %s195_s28 = sshll.u32 %s372_s3, 4  ;;  %s194_s2 = int_to_ptr.vmem [resolvable:$true] %s193_s2  ;;  %s196_s28 = int_to_ptr.hbm [resolvable:$true] %s195_s28 }
   0xf   :  { %v81_v6 = vsub.f32 %v56_v1, %v58_v4  ;;  %v70_v10 = vmul.f32 %v58_v4, %v58_v4 }
  0x10   :  { %v66_v7 = vsel %vm60_vm0, %v65_v2, 0.0  ;;  %v61_v8 = vsel %vm60_vm0, %v59_v3, 0.0  ;;  %v77_v9 = vmul.f32 %v76_v5, %v76_v5 }
  0x11   :  { %67 = vadd.xlane.f32.xlu1 %v66_v7  ;;  %62 = vadd.xlane.f32.xlu0 %v61_v8  ;;  %v82_v12 = vmul.f32 %v81_v6, %v81_v6  ;;  %v71_v13 = vsel %vm60_vm0, %v70_v10, 0.0 }
  0x12   :  { %v78_v11 = vsel %vm60_vm0, %v77_v9, 0.0 }
  0x13   :  { %79 = vadd.xlane.f32.xlu2 %v78_v11  ;;  %v83_v14 = vsel %vm60_vm0, %v82_v12, 0.0 }
  0x19   :  { %72 = vadd.xlane.f32.xlu0 %v71_v13  ;;  %84 = vadd.xlane.f32.xlu1 %v83_v14 }
  0x84   :  { %v68_v15 = vpop.xlane.xlu1 %67  ;;  %v63_v16 = vpop.xlane.xlu0 %62 }
  0x85   :  { %v69_v17 = vadd.f32 1e-06, %v68_v15  ;;  %v64_v18 = vadd.f32 1e-06, %v63_v16 }
  0x86   :  { %v80_v29 = vpop.xlane.xlu2 %79 }
  0x87   :  { %v86_v19 = vsub.f32 1.0, %v69_v17  ;;  %v75_v20 = vsub.f32 1.0, %v64_v18  ;;  %v90_v33 = vmul.f32 2.0, %v80_v29 }
  0x89   :  { %v87_v21 = vmul.f32 %v86_v19, %v75_v20 }
  0x8b   :  { %214 = vrcp.f32 %v87_v21  ;;  %v102_v30 = vand.u32 2147483648, %v87_v21  ;;  %v100_v32 = vand.u32 2147483647, %v87_v21  ;;  %vm96_vm2 = vweird.f32 %v87_v21 }
  0x8c   :  { %v73_v22 = vpop.xlane.xlu0 %72  ;;  %v85_v42 = vpop.xlane.xlu1 %84 }
  0x8d   :  { %v74_v23 = vadd.f32 1e-06, %v73_v22  ;;  %v103_v36 = vor.u32 1.1754944e-38, %v102_v30  ;;  %vm101_vm4 = vcmp.eq.f32.partialorder %v100_v32, 8.507059e+37  ;;  %v108_v47 = vmul.f32 2.0, %v85_v42 }
  0x8f   :  { %v88_v24 = vsub.f32 1.0, %v74_v23 }
  0x91   :  { %v215_v25 = vpop.eup %214  ;;  %v89_v26 = vmul.f32 %v88_v24, %v75_v20 }
  0x92   :  { %v92_v27 = vmul.f32 %v215_v25, %v87_v21  ;;  %vm97_vm1 = vweird.f32 %v215_v25 }
  0x93   :  { %216 = vrcp.f32 %v89_v26  ;;  %vm98_vm3 = vmor %vm96_vm2, %vm97_vm1  ;;  %v120_v43 = vand.u32 2147483648, %v89_v26  ;;  %v118_v46 = vand.u32 2147483647, %v89_v26  ;;  %vm114_vm6 = vweird.f32 %v89_v26 }
  0x94   :  { %v93_v28 = vsub.f32 1.0, %v92_v27  ;;  %vm175_vm1 = vcmask 7168  }
  0x95   :  { %v121_v49 = vor.u32 1.1754944e-38, %v120_v43  ;;  %vm119_vm8 = vcmp.eq.f32.partialorder %v118_v46, 8.507059e+37 }
  0x96   :  { %v94_v31 = vmul.f32 %v215_v25, %v93_v28 }
  0x98   :  { %v95_v34 = vadd.f32 %v215_v25, %v94_v31 }
  0x99   :  { %v217_v35 = vpop.eup %216 }
  0x9a   :  { %v99_v37 = vsel %vm98_vm3, %v215_v25, %v95_v34  ;;  %v110_v38 = vmul.f32 %v217_v35, %v89_v26  ;;  %vm115_vm5 = vweird.f32 %v217_v35 }
  0x9b   :  { %v104_v39 = vsel %vm101_vm4, %v103_v36, %v99_v37  ;;  %vm116_vm7 = vmor %vm114_vm6, %vm115_vm5 }
  0x9c   :  { %v105_v40 = vmul.f32 %v104_v39, %v90_v33  ;;  %v111_v41 = vsub.f32 1.0, %v110_v38 }
  0x9e   :  { %v106_v44 = vadd.f32 1.0, %v105_v40  ;;  %v112_v45 = vmul.f32 %v217_v35, %v111_v41 }
  0xa0   :  { %v113_v48 = vadd.f32 %v217_v35, %v112_v45  ;;  %v107_v50 = vmax.f32 %v106_v44, 1.0 }
  0xa2   :  { %v117_v51 = vsel %vm116_vm7, %v217_v35, %v113_v48  ;;  %v126_v54 = vmul.f32 %v107_v50, %v107_v50 }
  0xa3   :  { %v122_v52 = vsel %vm119_vm8, %v121_v49, %v117_v51 }
  0xa4   :  { %v123_v53 = vmul.f32 %v122_v52, %v108_v47  ;;  %v206_v57 = vadd.f32 -1.0, %v126_v54 }
  0xa6   :  { %v124_v55 = vadd.f32 1.0, %v123_v53  ;;  %218 = vrsqrt.f32 %v206_v57  ;;  %vm135_vm11 = vcmp.eq.f32.partialorder %v206_v57, inf  ;;  %v138_v18 = vand.u32 2147483648, %v206_v57 }
  0xa7   :  { %vm137_vm12 = vcmp.eq.f32.partialorder %v206_v57, 0.0 }
  0xa8   :  { %v125_v56 = vmax.f32 %v124_v55, 1.0 }
  0xaa   :  { %v141_v58 = vmul.f32 %v125_v56, %v125_v56 }
  0xac   :  { %v207_v59 = vadd.f32 -1.0, %v141_v58  ;;  %v219_v60 = vpop.eup %218 }
  0xad   :  { %v129_v63 = vmul.f32 %v219_v60, %v206_v57 }
  0xae   :  { %220 = vrsqrt.f32 %v207_v59  ;;  %vm150_vm9 = vcmp.eq.f32.partialorder %v207_v59, inf  ;;  %v153_v7 = vand.u32 2147483648, %v207_v59  ;;  %vm152_vm10 = vcmp.eq.f32.partialorder %v207_v59, 0.0 }
  0xaf   :  { %v130_v2 = vmul.f32 %v219_v60, %v129_v63 }
  0xb1   :  { %v131_v5 = vmul.f32 0.5, %v130_v2 }
  0xb3   :  { %v132_v9 = vsub.f32 1.5, %v131_v5 }
  0xb4   :  { %v221_v61 = vpop.eup %220 }
  0xb5   :  { %v144_v62 = vmul.f32 %v221_v61, %v207_v59  ;;  %v133_v12 = vmul.f32 %v219_v60, %v132_v9 }
  0xb7   :  { %v145_v0 = vmul.f32 %v221_v61, %v144_v62  ;;  %v134_v13 = vmul.f32 %v206_v57, %v133_v12 }
  0xb9   :  { %v146_v1 = vmul.f32 0.5, %v145_v0  ;;  %v136_v16 = vsel %vm135_vm11, %v206_v57, %v134_v13 }
  0xba   :  { %v139_v22 = vsel %vm137_vm12, %v138_v18, %v136_v16 }
  0xbb   :  { %v147_v3 = vsub.f32 1.5, %v146_v1  ;;  %v140_v25 = vadd.f32 %v139_v22, %v107_v50 }
  0xbd   :  { %v148_v4 = vmul.f32 %v221_v61, %v147_v3 }
  0xbf   :  { %v149_v6 = vmul.f32 %v207_v59, %v148_v4 }
  0xc1   :  { %v151_v8 = vsel %vm150_vm9, %v207_v59, %v149_v6 }
  0xc2   :  { %v154_v10 = vsel %vm152_vm10, %v153_v7, %v151_v8 }
  0xc3   :  { %v155_v11 = vadd.f32 %v154_v10, %v125_v56 }
  0xc5   :  { %222 = vrcp.f32 %v155_v11  ;;  %v167_v19 = vand.u32 2147483648, %v155_v11  ;;  %v165_v21 = vand.u32 2147483647, %v155_v11  ;;  %vm161_vm14 = vweird.f32 %v155_v11 }
  0xc7   :  { %v168_v24 = vor.u32 1.1754944e-38, %v167_v19  ;;  %vm166_vm0 = vcmp.eq.f32.partialorder %v165_v21, 8.507059e+37 }
  0xcb   :  { %v223_v14 = vpop.eup %222 }
  0xcc   :  { %v157_v15 = vmul.f32 %v223_v14, %v155_v11  ;;  %vm162_vm13 = vweird.f32 %v223_v14 }
  0xcd   :  { %vm163_vm15 = vmor %vm161_vm14, %vm162_vm13 }
  0xce   :  { %v158_v17 = vsub.f32 1.0, %v157_v15 }
  0xd0   :  { %v159_v20 = vmul.f32 %v223_v14, %v158_v17 }
  0xd2   :  { %v160_v23 = vadd.f32 %v223_v14, %v159_v20 }
  0xd4   :  { %v164_v26 = vsel %vm163_vm15, %v223_v14, %v160_v23 }
  0xd5   :  { %v169_v27 = vsel %vm166_vm0, %v168_v24, %v164_v26 }
  0xd6   :  { %v170_v28 = vmul.f32 %v169_v27, %v140_v25 }
  0xd8   :  { %224 = vlog2.f32 %v170_v28 }
  0xde   :  { %v225_v29 = vpop.eup %224 }
  0xdf   :  { %v172_v30 = vmul.f32 0.6931472, %v225_v29 }
  0xe1   :  { %v173_v31 = vadd.f32 1.0, %v172_v30 }
  0xe3   :  { %v174_v32 = vmax.f32 %v173_v31, 0.0 }
  0xe5   :  { %v176_v33 = vsel %vm175_vm1, %v174_v32, 0.0 }
  0xe6   :  { %177 = vadd.xlane.f32.xlu2 %v176_v33 }
 0x159   :  { %v178_v34 = vpop.xlane.xlu2 %177 }
 0x15a   :  { %v179_v35 = vrot.slane %v178_v34, 4 }
 0x15c   :  { %v180_v36 = vadd.f32 %v179_v35, %v178_v34 }
 0x15e   :  { %v181_v37 = vrot.slane %v180_v36, 2 }
 0x160   :  { %v182_v38 = vadd.f32 %v181_v37, %v180_v36 }
 0x162   :  { %v183_v39 = vrot.slane %v182_v38, 1 }
 0x164   :  { %v184_v40 = vadd.f32 %v183_v39, %v182_v38 }
 0x166   :  { %208 = vpush %v184_v40 }
 0x197   :  { %s209_s29 = spop %208 }
 0x198   :  { %v186_v41 = vstv %s209_s29 }
 0x199   :  { %187 = vst [vmem:[#allocation8] sm:$0xff] %v186_v41 }
 0x19a   :  { %198 = dma.vmem_to_hbm [thread:$0]  %s194_s2, 128, %s196_s28, [#allocation4]  }
 0x19b   :  { %326 = dma.done.wait [#allocation4], 128  }
 0x19c   :  { %327 = vsyncadd [#allocation4], 4294967168 }
 0x19d   :  { %203 = vsyncpa [#allocation3], 1 }
 0x19e   :  { %204 = vsyncpa [#allocation6], 1 }
 0x19f   :  { %205 = vsyncpa [#allocation4], 1 }

</bundles_post_ra>
